<compile_context>
chip_gen: v7x
topology: tpu7x:2x2x1
jax: 0.10.0
libtpu: 0.0.40
codegen_flags: <defaults>
</compile_context>

<pallas_src>
import math

import jax
import jax.numpy as jnp
from jax import lax
from jax.experimental import pallas as pl
from jax.experimental.pallas import tpu as pltpu


# ----------------------------------------------------------------------------
# Kernel: two lane-dense 2-D matmuls + fused BN-shift + ReLU
# ----------------------------------------------------------------------------

def _gcn_kernel(x_ref, wblk_ref, ablk_ref, shift_ref, o_ref):
    # x_ref:     (B*V, T*Cin)    rows = (batch, joint), lanes = (time, channel)
    # wblk_ref:  (T*Cin, T*Cout) kron(I_T, W * bn_scale)      [resident constant]
    # ablk_ref:  (B*V, B*V)      kron(I_B, norm_adj)          [resident constant]
    # shift_ref: (1, T*Cout)     folded BN shift, tiled over T
    # o_ref:     (B*V, T*Cout)   lane-dense (last dim = 128) -> unmasked stores
    z = jnp.dot(x_ref[...], wblk_ref[...],
                preferred_element_type=jnp.float32)          # feature transform
    agg = jnp.dot(ablk_ref[...], z,
                  preferred_element_type=jnp.float32)        # graph aggregation
    o_ref[...] = jnp.maximum(agg + shift_ref[...], 0.0)      # BN shift + ReLU


# ----------------------------------------------------------------------------
# Wrapper
# ----------------------------------------------------------------------------

def spatial_graph_conv(x, adj, w, bn_gamma, bn_beta, bn_mean, bn_var, eps=1e-5):
    """x: (B, T, V, Cin) -> (B, T, V, Cout). Eval-mode BatchNorm2d folded."""
    B, T, V, C = x.shape
    Cout = w.shape[1]

    # ---- hoisted constant work (runs once in the wrapper, tiny tensors) ----
    # Fold eval-mode BatchNorm2d into per-channel scale/shift; fold scale into W
    # (the pre-BN pipeline is linear in W), so the kernel epilogue is add+relu.
    inv_std = lax.rsqrt(bn_var.astype(jnp.float32) + eps)
    scale = bn_gamma.astype(jnp.float32) * inv_std
    shift = bn_beta.astype(jnp.float32) - bn_mean.astype(jnp.float32) * scale
    w_s = w.astype(jnp.float32) * scale[None, :]                       # (C, Cout)

    # Symmetric normalization D^-1/2 (A + I) D^-1/2 (recomputed per forward,
    # exactly like the PyTorch module, but once in the wrapper, not per step).
    adj_hat = adj.astype(jnp.float32) + jnp.eye(V, dtype=jnp.float32)
    dinv = adj_hat.sum(axis=1) ** -0.5
    norm_adj = dinv[:, None] * adj_hat * dinv[None, :]                 # (V, V)

    # Block-diagonal operands so the whole forward is two 2-D lane-dense matmuls.
    wblk = jnp.kron(jnp.eye(T, dtype=jnp.float32), w_s)                # (T*C, T*Cout)
    ablk = jnp.kron(jnp.eye(B, dtype=jnp.float32), norm_adj)           # (B*V, B*V)
    shift_t = jnp.tile(shift.reshape(1, Cout), (1, T))                 # (1, T*Cout)

    # rows = (b, v), lanes = (t, c): xr[b*V+v, t*C+c] = x[b, t, v, c]
    xr = x.transpose(0, 2, 1, 3).reshape(B * V, T * C).astype(jnp.float32)

    out2d = pl.pallas_call(
        _gcn_kernel,
        grid=(1,),
        in_specs=[
            pl.BlockSpec((B * V, T * C), lambda i: (0, 0)),
            pl.BlockSpec((T * C, T * Cout), lambda i: (0, 0)),
            pl.BlockSpec((B * V, B * V), lambda i: (0, 0)),
            pl.BlockSpec((1, T * Cout), lambda i: (0, 0)),
        ],
        out_specs=pl.BlockSpec((B * V, T * Cout), lambda i: (0, 0)),
        out_shape=jax.ShapeDtypeStruct((B * V, T * Cout), jnp.float32),
        compiler_params=pltpu.CompilerParams(
            dimension_semantics=("arbitrary",)),
    )(xr, wblk, ablk, shift_t)

    # Lane-dense kernel output -> module layout (wrapper-side layout plumbing).
    return out2d.reshape(B, V, T, Cout).transpose(0, 2, 1, 3)


# ----------------------------------------------------------------------------
# Pure-JAX reference (mirrors the PyTorch forward, eval-mode BatchNorm2d)
# ----------------------------------------------------------------------------

def ref_forward(x, adj, w, gamma, beta, mean, var, eps=1e-5):
    B, T, V, C = x.shape
    adj_hat = adj + jnp.eye(V, dtype=jnp.float32)
    deg = adj_hat.sum(axis=1)
    dinv = deg ** -0.5
    norm_adj = dinv[:, None] * adj_hat * dinv[None, :]
    h = jnp.matmul(norm_adj, x.reshape(B * T, V, C))       # (B*T, V, C)
    h = jnp.matmul(h, w)                                   # (B*T, V, Cout)
    h = h.reshape(B, T, V, -1)
    h = (h - mean) / jnp.sqrt(var + eps) * gamma + beta    # BatchNorm2d (eval)
    return jnp.maximum(h, 0.0)


# ----------------------------------------------------------------------------
# Main
# ----------------------------------------------------------------------------

if __name__ == "__main__":
    B, T, V, C, Cout = 2, 8, 16, 4, 16   # batch, time, joints, in_ch, out_ch

    key = jax.random.PRNGKey(0)
    kx, kadj, kw = jax.random.split(key, 3)

    x = jax.random.normal(kx, (B, T, V, C), dtype=jnp.float32)

    # Deterministic symmetric binary adjacency with zero diagonal.
    a = (jax.random.uniform(kadj, (V, V)) < 0.3).astype(jnp.float32)
    adj = jnp.maximum(a, a.T) * (1.0 - jnp.eye(V, dtype=jnp.float32))

    # kaiming_uniform_(a=sqrt(5)) -> U(-1/sqrt(Cin), 1/sqrt(Cin))
    bound = 1.0 / math.sqrt(C)
    w = jax.random.uniform(kw, (C, Cout), minval=-bound, maxval=bound,
                           dtype=jnp.float32)

    # Fresh BatchNorm2d in eval mode: gamma=1, beta=0, running_mean=0, var=1.
    gamma = jnp.ones((Cout,), jnp.float32)
    beta = jnp.zeros((Cout,), jnp.float32)
    mean = jnp.zeros((Cout,), jnp.float32)
    var = jnp.ones((Cout,), jnp.float32)

    out = spatial_graph_conv(x, adj, w, gamma, beta, mean, var)
    out = jax.block_until_ready(out)
    assert out.shape == (B, T, V, Cout)

    ref = ref_forward(x, adj, w, gamma, beta, mean, var)
    err = float(jnp.max(jnp.abs(out - ref)))
    assert err < 1e-4, f"max abs diff vs reference: {err}"

    print("KERNEL_OK")
</pallas_src>

<mosaic_0001>
module attributes {stable_mosaic.version = 11 : i64} {
  func.func @_gcn_kernel(%arg0: i32, %arg1: memref<32x32xf32, #tpu.memory_space<vmem>>, %arg2: memref<32x128xf32, #tpu.memory_space<vmem>>, %arg3: memref<32x32xf32, #tpu.memory_space<vmem>>, %arg4: memref<1x128xf32, #tpu.memory_space<vmem>>, %arg5: memref<32x128xf32, #tpu.memory_space<vmem>>) attributes {dimension_semantics = [#tpu.dimension_semantics<arbitrary>], iteration_bounds = array<i64: 1>, scalar_prefetch = 0 : i64, scratch_operands = 0 : i64, tpu.core_type = #tpu.core_type<tc>, window_params = [{pipeline_mode = #tpu.pipeline_mode<synchronous>, transform_indices = @transform_0, window_bounds = array<i64: 32, 32>}, {pipeline_mode = #tpu.pipeline_mode<synchronous>, transform_indices = @transform_1, window_bounds = array<i64: 32, 128>}, {pipeline_mode = #tpu.pipeline_mode<synchronous>, transform_indices = @transform_2, window_bounds = array<i64: 32, 32>}, {pipeline_mode = #tpu.pipeline_mode<synchronous>, transform_indices = @transform_3, window_bounds = array<i64: 1, 128>}, {pipeline_mode = #tpu.pipeline_mode<synchronous>, transform_indices = @transform_4, window_bounds = array<i64: 32, 128>}]} {
    %c0 = arith.constant 0 : index
    %c0_0 = arith.constant 0 : index
    %0 = vector.load %arg1[%c0, %c0_0] : memref<32x32xf32, #tpu.memory_space<vmem>>, vector<32x32xf32>
    %c0_1 = arith.constant 0 : index
    %c0_2 = arith.constant 0 : index
    %1 = vector.load %arg2[%c0_1, %c0_2] : memref<32x128xf32, #tpu.memory_space<vmem>>, vector<32x128xf32>
    %cst = arith.constant dense<0.000000e+00> : vector<32x128xf32>
    %2 = tpu.matmul %0, %1, %cst {dimension_numbers = #tpu.dot_dimension_numbers<[1], [0], [0], [1], [0, 0, 1, 1], [], []>} : vector<32x32xf32>, vector<32x128xf32>, vector<32x128xf32> -> vector<32x128xf32>
    %c0_3 = arith.constant 0 : index
    %c0_4 = arith.constant 0 : index
    %3 = vector.load %arg3[%c0_3, %c0_4] : memref<32x32xf32, #tpu.memory_space<vmem>>, vector<32x32xf32>
    %cst_5 = arith.constant dense<0.000000e+00> : vector<32x128xf32>
    %4 = tpu.matmul %3, %2, %cst_5 {dimension_numbers = #tpu.dot_dimension_numbers<[1], [0], [0], [1], [0, 0, 1, 1], [], []>} : vector<32x32xf32>, vector<32x128xf32>, vector<32x128xf32> -> vector<32x128xf32>
    %c0_6 = arith.constant 0 : index
    %c0_7 = arith.constant 0 : index
    %5 = vector.load %arg4[%c0_6, %c0_7] : memref<1x128xf32, #tpu.memory_space<vmem>>, vector<1x128xf32>
    %6 = vector.broadcast %5 : vector<1x128xf32> to vector<32x128xf32>
    %7 = arith.addf %4, %6 : vector<32x128xf32>
    %cst_8 = arith.constant 0.000000e+00 : f32
    %8 = vector.broadcast %cst_8 : f32 to vector<32x128xf32>
    %9 = arith.maximumf %7, %8 : vector<32x128xf32>
    %c0_9 = arith.constant 0 : index
    %c0_10 = arith.constant 0 : index
    %10 = vector.load %arg5[%c0_9, %c0_10] : memref<32x128xf32, #tpu.memory_space<vmem>>, vector<32x128xf32>
    tpu.vector_store %arg5[%c0_9, %c0_10], %9 {strides = array<i32>} : memref<32x128xf32, #tpu.memory_space<vmem>>, vector<32x128xf32>,
    return
  }
  func.func @transform_0(%arg0: i32) -> (i32, i32) {
    %c0_i32 = arith.constant 0 : i32
    %c0_i32_0 = arith.constant 0 : i32
    %c0_i32_1 = arith.constant 0 : i32
    return %c0_i32, %c0_i32_0 : i32, i32
  }
  func.func @transform_1(%arg0: i32) -> (i32, i32) {
    %c0_i32 = arith.constant 0 : i32
    %c0_i32_0 = arith.constant 0 : i32
    %c0_i32_1 = arith.constant 0 : i32
    return %c0_i32, %c0_i32_0 : i32, i32
  }
  func.func @transform_2(%arg0: i32) -> (i32, i32) {
    %c0_i32 = arith.constant 0 : i32
    %c0_i32_0 = arith.constant 0 : i32
    %c0_i32_1 = arith.constant 0 : i32
    return %c0_i32, %c0_i32_0 : i32, i32
  }
  func.func @transform_3(%arg0: i32) -> (i32, i32) {
    %c0_i32 = arith.constant 0 : i32
    %c0_i32_0 = arith.constant 0 : i32
    %c0_i32_1 = arith.constant 0 : i32
    return %c0_i32, %c0_i32_0 : i32, i32
  }
  func.func @transform_4(%arg0: i32) -> (i32, i32) {
    %c0_i32 = arith.constant 0 : i32
    %c0_i32_0 = arith.constant 0 : i32
    %c0_i32_1 = arith.constant 0 : i32
    return %c0_i32, %c0_i32_0 : i32, i32
  }
}

</mosaic_0001>

<bundles_post_ra>
// kernel: tpu_custom_call.1
= control target key start
LH: loop header
LB: loop body
LE: loop exit
PB: predicated region body
PF: predicated region fallthrough
CT: control target
= control target key end

     0   :  { %9 = vsyncpa [#allocation3], 0  ;;  %s577_s0 = inlined_call_operand.hbm [shape: f32[32,32], index: 0, kind: input, shape index: {}]   ;;  %s578_s1 = inlined_call_operand.hbm [shape: f32[32,128], index: 1, kind: input, shape index: {}]   ;;  %s579_s2 = inlined_call_operand.hbm [shape: f32[32,32], index: 2, kind: input, shape index: {}]   ;;  %s580_s3 = inlined_call_operand.vmem [shape: f32[1,128], index: 3, kind: input, shape index: {}]   ;;  %s581_s4 = inlined_call_operand.hbm [shape: f32[32,128], index: 4, kind: output, shape index: {}]  }
   0x1   :  { %10 = vsyncpa [#allocation6], 0 }
   0x2   :  { %11 = vsyncpa [#allocation4], 0  ;;  %s468_s15 = smov [#allocation5]   ;;  %s469_s17 = smov [#allocation2]  }
   0x3   :  { %s29_s16 = sshll.u32 %s468_s15, 4  ;;  %s17_s18 = sshll.u32 %s469_s17, 4  ;;  %s30_s16 = int_to_ptr.vmem [resolvable:$true] %s29_s16  ;;  %s499_s18 = int_to_ptr.vmem [resolvable:$true] %s17_s18 }
   0x4   :  { %s374_s21 = scalar_lea.hbm %s578_s1, 512 }
   0x5   :  { %p375_p0 = scmp.ne.s32.totalorder %s578_s1, %s374_s21  ;;  %p378_p1 = scmp.lt.u32.totalorder %s374_s21, %s578_s1 }
   0x7   :  { %p380_p2 = pnand %p378_p1, %p375_p0 }
   0x9   :  { %383 = shalt.err (!%p380_p2)
}
   0xa   :  { %s384_s26 = scalar_lea.vmem %s30_s16, 512  ;;  %p389_p4 = scmp.lt.s32.totalorder %s30_s16, %s30_s16 }
   0xb   :  { %p385_p3 = scmp.ne.s32.totalorder %s30_s16, %s384_s26  ;;  %p390_p5 = scmp.lt.s32.totalorder %s384_s26, %s384_s26 }
   0xd   :  { %p391_p6 = por %p390_p5, %p389_p4 }
   0xf   :  { %p392_p7 = pnand %p391_p6, %p385_p3 }
  0x11   :  { %395 = shalt.err (!%p392_p7)
}
  0x12   :  { %s470_s27 = smov 128   ;;  %s471_s28 = smov 8  }
  0x13   :  { %35 = dma.hbm_to_vmem [thread:$0]  %s578_s1, 512, %s30_s16, [#allocation6], %s470_s27, %s470_s27, %s471_s28  }
  0x14   :  { %s396_s7 = scalar_lea.hbm %s577_s0, 512 }
  0x15   :  { %p397_p8 = scmp.ne.s32.totalorder %s577_s0, %s396_s7  ;;  %p400_p9 = scmp.lt.u32.totalorder %s396_s7, %s577_s0 }
  0x17   :  { %p402_p10 = pnand %p400_p9, %p397_p8 }
  0x19   :  { %405 = shalt.err (!%p402_p10)
}
  0x1a   :  { %s406_s12 = scalar_lea.vmem %s499_s18, 512  ;;  %p411_p12 = scmp.lt.s32.totalorder %s499_s18, %s499_s18 }
  0x1b   :  { %p407_p11 = scmp.ne.s32.totalorder %s499_s18, %s406_s12  ;;  %p412_p13 = scmp.lt.s32.totalorder %s406_s12, %s406_s12 }
  0x1d   :  { %p413_p0 = por %p412_p13, %p411_p12 }
  0x1f   :  { %p414_p1 = pnand %p413_p0, %p407_p11 }
  0x21   :  { %417 = shalt.err (!%p414_p1)
}
  0x22   :  { %23 = dma.hbm_to_vmem [thread:$0]  %s577_s0, 512, %s499_s18, [#allocation3], %s470_s27, %s470_s27, %s471_s28  }
  0x23   :  { %s472_s14 = smov [#allocation7]   ;;  %s418_s19 = scalar_lea.hbm %s579_s2, 512 }
  0x24   :  { %s41_s15 = sshll.u32 %s472_s14, 4  ;;  %p419_p2 = scmp.ne.s32.totalorder %s579_s2, %s418_s19  ;;  %s42_s15 = int_to_ptr.vmem [resolvable:$true] %s41_s15 }
  0x25   :  { %p422_p3 = scmp.lt.u32.totalorder %s418_s19, %s579_s2 }
  0x27   :  { %p424_p4 = pnand %p422_p3, %p419_p2 }
  0x29   :  { %427 = shalt.err (!%p424_p4)
}
  0x2a   :  { %s428_s24 = scalar_lea.vmem %s42_s15, 512  ;;  %p433_p6 = scmp.lt.s32.totalorder %s42_s15, %s42_s15 }
  0x2b   :  { %p429_p5 = scmp.ne.s32.totalorder %s42_s15, %s428_s24  ;;  %p434_p7 = scmp.lt.s32.totalorder %s428_s24, %s428_s24 }
  0x2d   :  { %p435_p8 = por %p434_p7, %p433_p6 }
  0x2f   :  { %p436_p9 = pnand %p435_p8, %p429_p5 }
  0x31   :  { %439 = shalt.err (!%p436_p9)
}
  0x32   :  { %47 = dma.hbm_to_vmem [thread:$0]  %s579_s2, 512, %s42_s15, [#allocation6], %s470_s27, %s470_s27, %s471_s28  }
  0x33   :  { %462 = dma.done.wait [#allocation3], 512  }
  0x34   :  { %463 = vsyncadd [#allocation3], 4294966784 }
  0x35   :  { %464 = dma.done.wait [#allocation6], 1024  }
  0x36   :  { %465 = vsyncadd [#allocation6], 4294966272  ;;  %vm67_vm0 = vcmask 261120   ;;  %v63_v0 = vld [vmem:[#allocation5] sm:$0xff]  ;;  %v64_v1 = vld [vmem:[#allocation5 + $0x8] sm:$0xff]  ;;  %s473_s26 = smov [#allocation8]  }
  0x37   :  { %v65_v2 = vld [vmem:[#allocation5 + $0x10] sm:$0xff]  ;;  %v352_v3 = vpack.c.bf16 %v64_v1, %v63_v0  ;;  %v66_v4 = vld [vmem:[#allocation5 + $0x18] sm:$0xff]  ;;  %v59_v5 = vld [vmem:[#allocation2] sm:$0xff]  ;;  %s286_s29 = sshll.u32 %s473_s26, 4  ;;  %s287_s29 = int_to_ptr.vmem [resolvable:$true] %s286_s29 }
  0x38   :  { %v356_v6 = vpack.c.bf16 %v66_v4, %v65_v2  ;;  %332 = vmatprep.mubr.msk.f32.mxu0 %vm67_vm0, %v59_v5  ;;  %v60_v7 = vld [vmem:[#allocation2 + $0x8] sm:$0xff]  ;;  %v61_v8 = vld [vmem:[#allocation2 + $0x10] sm:$0xff]  ;;  %v62_v9 = vld [vmem:[#allocation2 + $0x18] sm:$0xff]  ;;  %p445_p11 = scmp.lt.s32.totalorder %s287_s29, %s287_s29 }
  0x39   :  { %353 = vmatprep.subr.bf16.mxu0 %v352_v3  ;;  %v165_v10 = vld [vmem:[#allocation7] sm:$0xff]  ;;  %v166_v17 = vld [vmem:[#allocation7 + $0x8] sm:$0xff]  ;;  %v167_v18 = vld [vmem:[#allocation7 + $0x10] sm:$0xff] }
  0x3a   :  { %355 = vmatpush3.bf16.msra.mxu0 %v352_v3  ;;  %346 = vmatprep.mubr.msk.f32.mxu1 %vm67_vm0, %v165_v10  ;;  %v168_v19 = vld [vmem:[#allocation7 + $0x18] sm:$0xff]  ;;  %v303_v20 = vld [vmem:[%s580_s3] ss:$0 sm:$0xff]  ;;  %s440_s3 = scalar_lea.vmem %s287_s29, 512 }
  0x3b   :  { %357 = vmatprep.subr.bf16.mxu0 %v356_v6  ;;  %p441_p10 = scmp.ne.s32.totalorder %s287_s29, %s440_s3  ;;  %p446_p12 = scmp.lt.s32.totalorder %s440_s3, %s440_s3 }
  0x3d   :  { %p447_p13 = por %p446_p12, %p445_p11 }
  0x3e   :  { %359 = vmatpush3.bf16.msra.mxu0 %v356_v6 }
  0x3f   :  { %p448_p0 = pnand %p447_p13, %p441_p10 }
  0x41   :  { %333 = vmatmul.mubr.msk.f32.vlgmr.msra.gmra.mrb[0].mxu0 %vm67_vm0, %v60_v7 }
  0x42   :  { %335 = vmatprep.mubr.msk.f32.mxu0 %vm67_vm0, %v61_v8 }
  0x45   :  { %336 = vmatmul.mubr.msk.f32.gmra.mrb[2].mxu0 %vm67_vm0, %v62_v9 }
 0x114   :  { %v334_v11 = vpop.f32.mrb[0].mxu0 }
 0x115   :  { %v146_v12 = vpop.f32.mrb[1].mxu0 }
 0x116   :  { %v360_v13 = vpack.c.bf16 %v334_v11, %v146_v12 }
 0x118   :  { %v337_v14 = vpop.f32.mrb[2].mxu0  ;;  %361 = vmatprep.subr.bf16.mxu1 %v360_v13 }
 0x119   :  { %v156_v15 = vpop.f32.mrb[3].mxu0  ;;  %363 = vmatpush3.bf16.msra.mxu1 %v360_v13 }
 0x11a   :  { %v364_v16 = vpack.c.bf16 %v337_v14, %v156_v15 }
 0x11c   :  { %365 = vmatprep.subr.bf16.mxu1 %v364_v16 }
 0x11d   :  { %367 = vmatpush3.bf16.msra.mxu1 %v364_v16 }
 0x120   :  { %347 = vmatmul.mubr.msk.f32.vlgmr.msra.gmra.mrb[0].mxu1 %vm67_vm0, %v166_v17 }
 0x121   :  { %349 = vmatprep.mubr.msk.f32.mxu1 %vm67_vm0, %v167_v18 }
 0x124   :  { %350 = vmatmul.mubr.msk.f32.gmra.mrb[2].mxu1 %vm67_vm0, %v168_v19 }
 0x1f3   :  { %v348_v21 = vpop.f32.mrb[0].mxu1 }
 0x1f4   :  { %v260_v22 = vadd.f32 %v348_v21, %v303_v20  ;;  %v254_v23 = vpop.f32.mrb[1].mxu1 }
 0x1f5   :  { %v255_v24 = vadd.f32 %v303_v20, %v254_v23 }
 0x1f6   :  { %v274_v25 = vmax.f32 %v260_v22, 0.0 }
 0x1f7   :  { %v273_v26 = vmax.f32 %v255_v24, 0.0  ;;  %v351_v27 = vpop.f32.mrb[2].mxu1 }
 0x1f8   :  { %278 = vst [vmem:[#allocation8 + $0x8] sm:$0xff] %v274_v25  ;;  %v270_v28 = vadd.f32 %v351_v27, %v303_v20  ;;  %v264_v29 = vpop.f32.mrb[3].mxu1 }
 0x1f9   :  { %277 = vst [vmem:[#allocation8] sm:$0xff] %v273_v26  ;;  %v265_v30 = vadd.f32 %v303_v20, %v264_v29 }
 0x1fa   :  { %v276_v31 = vmax.f32 %v270_v28, 0.0 }
 0x1fb   :  { %v275_v32 = vmax.f32 %v265_v30, 0.0 }
 0x1fc   :  { %280 = vst [vmem:[#allocation8 + $0x18] sm:$0xff] %v276_v31 }
 0x1fd   :  { %279 = vst [vmem:[#allocation8 + $0x10] sm:$0xff] %v275_v32 }
 0x1fe   :  { %451 = shalt.err (!%p448_p0)
}
 0x1ff   :  { %s452_s6 = scalar_lea.hbm %s581_s4, 512 }
 0x200   :  { %p453_p1 = scmp.ne.s32.totalorder %s581_s4, %s452_s6  ;;  %p456_p2 = scmp.lt.u32.totalorder %s452_s6, %s581_s4 }
 0x202   :  { %p458_p3 = pnand %p456_p2, %p453_p1 }
 0x204   :  { %461 = shalt.err (!%p458_p3)
}
 0x205   :  { %292 = dma.vmem_to_hbm [thread:$0]  %s287_s29, 512, %s581_s4, [#allocation4], %s470_s27, %s470_s27, %s471_s28  }
 0x206   :  { %466 = dma.done.wait [#allocation4], 512  }
 0x207   :  { %467 = vsyncadd [#allocation4], 4294966784 }
 0x208   :  { %296 = vsyncpa [#allocation3], 1 }
 0x209   :  { %297 = vsyncpa [#allocation6], 1 }
 0x20a   :  { %298 = vsyncpa [#allocation4], 1 }

</bundles_post_ra>
